<compile_context>
chip_gen: v6e
topology: v6e:2x2x1
jax: 0.10.0
libtpu: 0.0.40
codegen_flags: <defaults>
</compile_context>

<pallas_src>
import functools

import jax
import jax.numpy as jnp
from jax.experimental import pallas as pl
from jax.experimental.pallas import tpu as pltpu


def _layernorm_rows_kernel(x_ref, a_ref, b_ref, o_ref, *, eps, inv_n, inv_nm1):
    """Path for features >= 128 (or non power-of-two divisors of 128)."""
    x = x_ref[...].astype(jnp.float32)                        # (RT, F)
    mean = jnp.sum(x, axis=-1, keepdims=True) * jnp.float32(inv_n)
    diff = x - mean
    var = jnp.sum(diff * diff, axis=-1, keepdims=True) * jnp.float32(inv_nm1)
    inv = pl.reciprocal(jnp.sqrt(var) + jnp.float32(eps))     # exact per-row column
    o_ref[...] = (diff * inv * a_ref[...] + b_ref[...]).astype(o_ref.dtype)


def _layernorm_packed_kernel(x_ref, a_ref, b_ref, seg_ref, o_ref, *, eps, inv_n, inv_nm1):
    """Lane-dense path: pack = 128 // features rows per 128-lane row."""
    x = x_ref[...].astype(jnp.float32)                        # (RT, 128)
    seg = seg_ref[...]                                        # (128, 128) bf16, block-diag ones

    def seg_sum(v):
        # Segmented sum broadcast back to every lane of its segment, via MXU.
        # Two bf16 limbs keep ~f32 accuracy using only native bf16 matmuls.
        hi = v.astype(jnp.bfloat16)
        lo = (v - hi.astype(jnp.float32)).astype(jnp.bfloat16)
        return (jnp.dot(hi, seg, preferred_element_type=jnp.float32)
                + jnp.dot(lo, seg, preferred_element_type=jnp.float32))

    mean = seg_sum(x) * jnp.float32(inv_n)
    diff = x - mean
    var = seg_sum(diff * diff) * jnp.float32(inv_nm1)
    inv = pl.reciprocal(jnp.sqrt(var) + jnp.float32(eps))
    o_ref[...] = (diff * inv * a_ref[...] + b_ref[...]).astype(o_ref.dtype)


def _chip_config():
    kind = ""
    try:
        kind = jax.devices()[0].device_kind.lower()
    except Exception:
        pass
    is_v7x = ("v7" in kind) or ("7x" in kind)
    if is_v7x:
        # Only CORE_PARALLEL actually shards the grid across v7x's two TCs.
        core_par = getattr(pltpu, "CORE_PARALLEL", None)
        return dict(
            target_block_bytes=8 << 20,   # amortize per-step overhead vs 3.2 TB/s HBM
            vmem_row_budget=40 << 20,     # blocks + f32 temps under 64 MiB physical VMEM
            vmem_cap_bytes=48 << 20,
            min_steps=8,                  # >= 2 pipelined steps per TensorCore
            dimension_semantics=(core_par,) if core_par is not None else ("parallel",),
        )
    return dict(
        target_block_bytes=4 << 20,       # ~85%+ of HBM roofline on v5e/v6e
        vmem_row_budget=80 << 20,         # 128 MiB physical VMEM on v5e/v6e
        vmem_cap_bytes=100 << 20,
        min_steps=2,
        dimension_semantics=("parallel",),
    )


def _pick_row_tile(n_rows, width, itemsize, *, align, target_block_bytes,
                   vmem_row_budget, min_steps):
    # Per-row VMEM: 2x double-buffered input + 2x output block rows plus ~4
    # full-width f32 temporaries materialized inside the kernel.
    per_row_vmem = width * (4 * itemsize + 4 * 4)
    rt_budget = (vmem_row_budget // per_row_vmem) // align * align
    rt_target = (target_block_bytes // max(width * itemsize, 1)) // align * align
    rt = max(align, min(rt_budget, rt_target))
    rows_up = ((n_rows + align - 1) // align) * align
    rt = min(rt, rows_up)
    # Keep >= min_steps grid steps so the pipeline double-buffers (>=2 per core
    # on v7x). Per-step overhead (~0.35us) is negligible at these block sizes.
    if min_steps > 1 and rows_up > align:
        per_step = -(-rows_up // min_steps)
        per_step = ((per_step + align - 1) // align) * align
        rt = min(rt, max(align, per_step))
    return rt


def layer_norm(x, a_2, b_2, eps: float = 1e-6, row_tile: int | None = None):
    """LayerNorm over the last axis of x (any leading shape)."""
    features = x.shape[-1]
    lead_shape = x.shape[:-1]
    rows = 1
    for d in lead_shape:
        rows *= d
    orig_rows = rows
    x2 = x.reshape(rows, features)
    itemsize = jnp.dtype(x.dtype).itemsize
    cfg = _chip_config()

    a2 = a_2.reshape(1, features).astype(jnp.float32)
    b2 = b_2.reshape(1, features).astype(jnp.float32)

    # Lane-dense packing for narrow feature dims (divisors of 128 are the
    # powers of two <= 128, so segments always align to the 128-lane vreg).
    pack = 128 // features if (0 < features < 128 and 128 % features == 0) else 1

    if pack > 1:
        rows_pad = ((rows + pack - 1) // pack) * pack
        if rows_pad != rows:
            x2 = jnp.pad(x2, ((0, rows_pad - rows), (0, 0)))  # zero rows; sliced off below
        width = pack * features                                # == 128
        n_rows = rows_pad // pack
        x2 = x2.reshape(n_rows, width)
        a2 = jnp.tile(a2, (1, pack))
        b2 = jnp.tile(b2, (1, pack))
        seg_id = jnp.arange(width, dtype=jnp.int32) // features
        seg = (seg_id[:, None] == seg_id[None, :]).astype(jnp.bfloat16)
    else:
        width = features
        n_rows = rows
        seg = None

    # Sublane alignment for the input dtype: f32 -> 8, bf16 -> 16, int8/fp8 -> 32.
    align = {4: 8, 2: 16, 1: 32}.get(itemsize, 8)
    if row_tile is None:
        row_tile = _pick_row_tile(
            n_rows, width, itemsize, align=align,
            target_block_bytes=cfg["target_block_bytes"],
            vmem_row_budget=cfg["vmem_row_budget"], min_steps=cfg["min_steps"])
    if row_tile > n_rows:
        row_tile = n_rows  # full-dim block is always a legal block shape

    grid = (pl.cdiv(n_rows, row_tile),)

    inv_n = 1.0 / float(features)
    # features == 1: ddof=1 reference is NaN; we return b_2 (documented divergence).
    inv_nm1 = 1.0 / float(max(features - 1, 1))

    # VMEM: double-buffered in/out blocks + ~4 full-tile f32 temps + params +
    # (packed) segment matrix + headroom.
    block_bytes = row_tile * width * itemsize
    vmem_needed = (4 * block_bytes + 4 * row_tile * width * 4 + 4 * width * 4
                   + (2 * width * width * 2 if pack > 1 else 0) + (2 << 20))
    vmem_limit = int(min(max(vmem_needed, 16 << 20), cfg["vmem_cap_bytes"]))

    bytes_accessed = 2 * n_rows * width * itemsize + 2 * width * 4
    flops = 8 * n_rows * width + (8 * n_rows * width * width if pack > 1 else 2 * n_rows * width)
    cost = pl.CostEstimate(flops=int(flops), transcendentals=int(2 * n_rows * width),
                           bytes_accessed=int(bytes_accessed))

    if pack > 1:
        kernel = functools.partial(_layernorm_packed_kernel, eps=float(eps),
                                   inv_n=inv_n, inv_nm1=inv_nm1)
        in_specs = [
            pl.BlockSpec((row_tile, width), lambda i: (i, 0)),
            pl.BlockSpec((1, width), lambda i: (0, 0)),
            pl.BlockSpec((1, width), lambda i: (0, 0)),
            pl.BlockSpec((width, width), lambda i: (0, 0)),
        ]
        operands = (x2, a2, b2, seg)
    else:
        kernel = functools.partial(_layernorm_rows_kernel, eps=float(eps),
                                   inv_n=inv_n, inv_nm1=inv_nm1)
        in_specs = [
            pl.BlockSpec((row_tile, width), lambda i: (i, 0)),
            pl.BlockSpec((1, width), lambda i: (0, 0)),
            pl.BlockSpec((1, width), lambda i: (0, 0)),
        ]
        operands = (x2, a2, b2)

    out = pl.pallas_call(
        kernel,
        out_shape=jax.ShapeDtypeStruct((n_rows, width), x.dtype),
        grid_spec=pltpu.PrefetchScalarGridSpec(
            num_scalar_prefetch=0,
            grid=grid,
            in_specs=in_specs,
            out_specs=pl.BlockSpec((row_tile, width), lambda i: (i, 0)),
        ),
        compiler_params=pltpu.CompilerParams(
            dimension_semantics=cfg["dimension_semantics"],
            vmem_limit_bytes=vmem_limit,
        ),
        cost_estimate=cost,
    )(*operands)

    if pack > 1:
        out = out.reshape(n_rows * pack, features)
    out = out[:orig_rows]
    return out.reshape(*lead_shape, features)


if __name__ == "__main__":
    key = jax.random.PRNGKey(0)
    k1, k2, k3, k4 = jax.random.split(key, 4)
    eps = 1e-6

    def reference(x, a, b, eps):
        mean = jnp.mean(x, axis=-1, keepdims=True)
        std = jnp.std(x, axis=-1, keepdims=True, ddof=1)  # torch.std default (unbiased)
        return a * (x - mean) / (std + eps) + b

    # 1) Narrow features (< 128): exercises the lane-dense packed path.
    batch, seq, features = 2, 32, 32
    x = jax.random.normal(k1, (batch, seq, features), dtype=jnp.float32)
    a_2 = jnp.ones((features,), dtype=jnp.float32)    # nn.Parameter(torch.ones(features))
    b_2 = jnp.zeros((features,), dtype=jnp.float32)   # nn.Parameter(torch.zeros(features))
    y = jax.block_until_ready(layer_norm(x, a_2, b_2, eps))
    assert y.shape == x.shape
    assert jnp.allclose(y, reference(x, a_2, b_2, eps), atol=1e-5, rtol=1e-5)

    # 2) Wide, already lane-dense features (>= 128): exercises the per-row path.
    xw = jax.random.normal(k2, (2, 24, 256), dtype=jnp.float32)
    a_2w = 1.0 + 0.1 * jax.random.normal(k3, (256,), dtype=jnp.float32)
    b_2w = 0.1 * jax.random.normal(k4, (256,), dtype=jnp.float32)
    yw = jax.block_until_ready(layer_norm(xw, a_2w, b_2w, eps))
    assert yw.shape == xw.shape
    assert jnp.allclose(yw, reference(xw, a_2w, b_2w, eps), atol=1e-5, rtol=1e-5)

    print("KERNEL_OK")
</pallas_src>

<mosaic_0001>
module attributes {stable_mosaic.version = 11 : i64} {
  func.func @_layernorm_packed_kernel(%arg0: i32, %arg1: memref<8x128xf32, #tpu.memory_space<vmem>>, %arg2: memref<1x128xf32, #tpu.memory_space<vmem>>, %arg3: memref<1x128xf32, #tpu.memory_space<vmem>>, %arg4: memref<128x128xbf16, #tpu.memory_space<vmem>>, %arg5: memref<8x128xf32, #tpu.memory_space<vmem>>) attributes {dimension_semantics = [#tpu.dimension_semantics<parallel>], iteration_bounds = array<i64: 2>, scalar_prefetch = 0 : i64, scratch_operands = 0 : i64, tpu.core_type = #tpu.core_type<tc>, window_params = [{transform_indices = @transform_0, window_bounds = array<i64: 8, 128>}, {pipeline_mode = #tpu.pipeline_mode<synchronous>, transform_indices = @transform_1, window_bounds = array<i64: 1, 128>}, {pipeline_mode = #tpu.pipeline_mode<synchronous>, transform_indices = @transform_2, window_bounds = array<i64: 1, 128>}, {pipeline_mode = #tpu.pipeline_mode<synchronous>, transform_indices = @transform_3, window_bounds = array<i64: 128, 128>}, {transform_indices = @transform_4, window_bounds = array<i64: 8, 128>}]} {
    %c0 = arith.constant 0 : index
    %c0_0 = arith.constant 0 : index
    %0 = vector.load %arg1[%c0, %c0_0] : memref<8x128xf32, #tpu.memory_space<vmem>>, vector<8x128xf32>
    %c0_1 = arith.constant 0 : index
    %c0_2 = arith.constant 0 : index
    %1 = vector.load %arg4[%c0_1, %c0_2] : memref<128x128xbf16, #tpu.memory_space<vmem>>, vector<128x128xbf16>
    %2 = arith.truncf %0 : vector<8x128xf32> to vector<8x128xbf16>
    %3 = arith.extf %2 : vector<8x128xbf16> to vector<8x128xf32>
    %4 = arith.subf %0, %3 : vector<8x128xf32>
    %5 = arith.truncf %4 : vector<8x128xf32> to vector<8x128xbf16>
    %cst = arith.constant dense<0.000000e+00> : vector<8x128xf32>
    %6 = tpu.matmul %2, %1, %cst {dimension_numbers = #tpu.dot_dimension_numbers<[1], [0], [0], [1], [0, 0, 1, 1], [], []>} : vector<8x128xbf16>, vector<128x128xbf16>, vector<8x128xf32> -> vector<8x128xf32>
    %cst_3 = arith.constant dense<0.000000e+00> : vector<8x128xf32>
    %7 = tpu.matmul %5, %1, %cst_3 {dimension_numbers = #tpu.dot_dimension_numbers<[1], [0], [0], [1], [0, 0, 1, 1], [], []>} : vector<8x128xbf16>, vector<128x128xbf16>, vector<8x128xf32> -> vector<8x128xf32>
    %8 = arith.addf %6, %7 : vector<8x128xf32>
    %cst_4 = arith.constant 3.125000e-02 : f32
    %9 = vector.broadcast %cst_4 : f32 to vector<8x128xf32>
    %10 = arith.mulf %8, %9 : vector<8x128xf32>
    %11 = arith.subf %0, %10 : vector<8x128xf32>
    %12 = arith.mulf %11, %11 : vector<8x128xf32>
    %13 = arith.truncf %12 : vector<8x128xf32> to vector<8x128xbf16>
    %14 = arith.extf %13 : vector<8x128xbf16> to vector<8x128xf32>
    %15 = arith.subf %12, %14 : vector<8x128xf32>
    %16 = arith.truncf %15 : vector<8x128xf32> to vector<8x128xbf16>
    %cst_5 = arith.constant dense<0.000000e+00> : vector<8x128xf32>
    %17 = tpu.matmul %13, %1, %cst_5 {dimension_numbers = #tpu.dot_dimension_numbers<[1], [0], [0], [1], [0, 0, 1, 1], [], []>} : vector<8x128xbf16>, vector<128x128xbf16>, vector<8x128xf32> -> vector<8x128xf32>
    %cst_6 = arith.constant dense<0.000000e+00> : vector<8x128xf32>
    %18 = tpu.matmul %16, %1, %cst_6 {dimension_numbers = #tpu.dot_dimension_numbers<[1], [0], [0], [1], [0, 0, 1, 1], [], []>} : vector<8x128xbf16>, vector<128x128xbf16>, vector<8x128xf32> -> vector<8x128xf32>
    %19 = arith.addf %17, %18 : vector<8x128xf32>
    %cst_7 = arith.constant 0.0322580636 : f32
    %20 = vector.broadcast %cst_7 : f32 to vector<8x128xf32>
    %21 = arith.mulf %19, %20 : vector<8x128xf32>
    %22 = math.sqrt %21 : vector<8x128xf32>
    %cst_8 = arith.constant 9.99999997E-7 : f32
    %23 = vector.broadcast %cst_8 : f32 to vector<8x128xf32>
    %24 = arith.addf %22, %23 : vector<8x128xf32>
    %25 = tpu.reciprocal %24 : vector<8x128xf32> -> vector<8x128xf32>
    %26 = arith.mulf %11, %25 : vector<8x128xf32>
    %c0_9 = arith.constant 0 : index
    %c0_10 = arith.constant 0 : index
    %27 = vector.load %arg2[%c0_9, %c0_10] : memref<1x128xf32, #tpu.memory_space<vmem>>, vector<1x128xf32>
    %28 = vector.broadcast %27 : vector<1x128xf32> to vector<8x128xf32>
    %29 = arith.mulf %26, %28 : vector<8x128xf32>
    %c0_11 = arith.constant 0 : index
    %c0_12 = arith.constant 0 : index
    %30 = vector.load %arg3[%c0_11, %c0_12] : memref<1x128xf32, #tpu.memory_space<vmem>>, vector<1x128xf32>
    %31 = vector.broadcast %30 : vector<1x128xf32> to vector<8x128xf32>
    %32 = arith.addf %29, %31 : vector<8x128xf32>
    %c0_13 = arith.constant 0 : index
    %c0_14 = arith.constant 0 : index
    %33 = vector.load %arg5[%c0_13, %c0_14] : memref<8x128xf32, #tpu.memory_space<vmem>>, vector<8x128xf32>
    tpu.vector_store %arg5[%c0_13, %c0_14], %32 {strides = array<i32>} : memref<8x128xf32, #tpu.memory_space<vmem>>, vector<8x128xf32>,
    return
  }
  func.func @transform_0(%arg0: i32) -> (i32, i32) {
    %c0_i32 = arith.constant 0 : i32
    %c0_i32_0 = arith.constant 0 : i32
    return %arg0, %c0_i32 : i32, i32
  }
  func.func @transform_1(%arg0: i32) -> (i32, i32) {
    %c0_i32 = arith.constant 0 : i32
    %c0_i32_0 = arith.constant 0 : i32
    %c0_i32_1 = arith.constant 0 : i32
    return %c0_i32, %c0_i32_0 : i32, i32
  }
  func.func @transform_2(%arg0: i32) -> (i32, i32) {
    %c0_i32 = arith.constant 0 : i32
    %c0_i32_0 = arith.constant 0 : i32
    %c0_i32_1 = arith.constant 0 : i32
    return %c0_i32, %c0_i32_0 : i32, i32
  }
  func.func @transform_3(%arg0: i32) -> (i32, i32) {
    %c0_i32 = arith.constant 0 : i32
    %c0_i32_0 = arith.constant 0 : i32
    %c0_i32_1 = arith.constant 0 : i32
    return %c0_i32, %c0_i32_0 : i32, i32
  }
  func.func @transform_4(%arg0: i32) -> (i32, i32) {
    %c0_i32 = arith.constant 0 : i32
    %c0_i32_0 = arith.constant 0 : i32
    return %arg0, %c0_i32 : i32, i32
  }
}

</mosaic_0001>

<bundles_post_ra>
// kernel: tpu_custom_call.1
= control target key start
LH: loop header
LB: loop body
LE: loop exit
PB: predicated region body
PF: predicated region fallthrough
CT: control target
= control target key end

     0   :  { %9 = vsyncpa [#allocation3], 0  ;;  %s1166_s0 = inlined_call_operand.hbm [shape: f32[16,128], index: 0, kind: input, shape index: {}]   ;;  %s1167_s1 = inlined_call_operand.vmem [shape: f32[1,128], index: 1, kind: input, shape index: {}]   ;;  %s1168_s2 = inlined_call_operand.vmem [shape: f32[1,128], index: 2, kind: input, shape index: {}]   ;;  %s1169_s3 = inlined_call_operand.hbm [shape: bf16[128,128], index: 3, kind: input, shape index: {}]   ;;  %s1170_s4 = inlined_call_operand.hbm [shape: f32[16,128], index: 4, kind: output, shape index: {}]  }
   0x1   :  { %11 = vsyncpa [#allocation3 + $0x1], 0 }
   0x2   :  { %12 = vsyncpa [#allocation6], 0 }
   0x3   :  { %13 = vsyncpa [#allocation4], 0 }
   0x4   :  { %15 = vsyncpa [#allocation4 + $0x1], 0  ;;  %s956_s15 = smov 0   ;;  %s958_s16 = smov 0  }
   0x5   :  { %s960_s17 = smov 0   ;;  %s962_s18 = smov 0  }
   0x6 LB: > { %s977_s19 = sadd.s32 4294967295, %s922_s18   ;;  %s587_s20 = sadd.s32 4294967294, %s922_s18   ;;  %s922_s18 = sphi %s962_s18, %s1192_s18   ;;  %s918_s17 = sphi %s960_s17, %s1191_s17   ;;  %s914_s16 = sphi %s958_s16, %s1190_s16   ;;  %s910_s15 = sphi %s956_s15, %s1189_s15  }
   0x7   : > { %p41_p0 = scmp.ne.s32.totalorder %s914_s16, %s910_s15  ;;  %p1171_p1 = scmp.eq.s32.totalorder %s977_s19, 0 }
   0x8   : > { %p134_p3 = scmp.eq.s32.totalorder %s587_s20, 1  ;;  %p588_p5 = scmp.ge.s32.totalorder %s922_s18, 1 }
   0x9   : > { %p986_p4 = por %p1171_p1, %p41_p0  ;;  %p141_p7 = scmp.lt.s32.totalorder %s922_s18, 3 }
   0xa   : > { %p991_p6 = por %p134_p3, %p41_p0  ;;  %s924_s24 = smov [#allocation5]  }
   0xb   : > { %s1175_s21 = scalar_select %p986_p4, 1, 0 }
   0xc   : > { %s1176_s22 = scalar_select %p991_p6, 1, 0 }
   0xd   : > { %p996_p8 = pnand %p588_p5, %p141_p7  ;;  %s159_s25 = sshll.u32 %s924_s24, 4  ;;  %s160_s25 = int_to_ptr.vmem [resolvable:$true] %s159_s25 }
   0xe   : > { %s1010_s27 = sadd.s32 1, %s922_s18   ;;  %s28_s28 = sadd.s32 1, %s918_s17 }
   0xf   : > { %s1177_s23 = scalar_select %p996_p8, 1, 0 }
  0x10   : > { %p735_p9 = pneg %p996_p8  ;;  %s25_s29 = ssub.s32 %s922_s18, %s1010_s27 }
  0x11   : > { %s811_s30 = scalar_lea.vmem %s160_s25, 1024  ;;  %p819_p5 = scmp.lt.s32.totalorder %s160_s25, %s160_s25 }
  0x12   : > { %p1005_p11 = pnand %p735_p9, %p1171_p1  ;;  %p812_p13 = scmp.ne.s32.totalorder %s160_s25, %s811_s30 }
  0x13   : > { %p820_p7 = scmp.lt.s32.totalorder %s811_s30, %s811_s30 }
  0x14   : > { %p802_p12 = pneg %p1005_p11 }
  0x15   : > { %p821_p10 = por %p820_p7, %p819_p5 }
  0x16   : > { %p814_p0 = pnand %p812_p13, %p802_p12 }
  0x18   : > { %p815_p3 = pneg %p814_p0 }
  0x1a   : > { %p822_p2 = pnand %p821_p10, %p815_p3 }
  0x1c   : > { %825 = shalt.err (!%p822_p2)
}
  0x1d   : > { %s925_s5 = smov 64   ;;  %s926_s6 = smov 4  }
  0x1e   : > { %738 = dma.hbm_to_vmem [thread:$0]  (!%p1005_p11), %s1169_s3, 1024, %s160_s25, [#allocation6], %s925_s5, %s925_s5, %s926_s6  }
  0x1f   : > { %p26_p9 = scmp.eq.s32.totalorder %s25_s29, 0  ;;  %p35_p12 = scmp.ne.s32.totalorder %s918_s17, %s914_s16 }
  0x20   : > { %p36_p10 = scmp.eq.s32.totalorder %s922_s18, 0  ;;  %p748_p2 = scmp.lt.s32.totalorder %s922_s18, 2 }
  0x21   : > { %s1027_s9 = scalar_select %p26_p9, %s918_s17, %s28_s28  }
  0x22   : > { %p37_p13 = por %p36_p10, %p35_p12  ;;  %p1179_p0 = scmp.eq.s32.totalorder %s977_s19, 1 }
  0x23   : > { %s173_s11 = sand.u32 1, %s918_s17   ;;  %s592_s12 = sshll.u32 %s922_s18, 7 }
  0x24   : > { %p1031_p3 = por %p1179_p0, %p35_p12  ;;  %s591_s13 = sshll.u32 %s173_s11, 3 }
  0x25   : > { %s1040_s24 = scalar_lea.hbm %s1166_s0, %s592_s12  ;;  %s177_s25 = scalar_lea.vmem [#allocation2], %s591_s13 }
  0x26   : > { %s1180_s10 = scalar_select %p1031_p3, 1, 0 }
  0x27   : > { %s184_s26 = sshll.u32 %s177_s25, 4  ;;  %p1042_p11 = pnand %p748_p2, %p37_p13  ;;  %s185_s26 = int_to_ptr.vmem [resolvable:$true] %s184_s26 }
  0x28   : > { %s174_s29 = scalar_lea.sflag [#allocation3], %s173_s11  ;;  %s826_s30 = scalar_lea.hbm %s1040_s24, 128 }
  0x29   : > { %p827_p5 = scmp.ne.s32.totalorder %s1040_s24, %s826_s30  ;;  %p828_p7 = pneg %p1042_p11 }
  0x2a   : > { %s831_s7 = scalar_lea.hbm %s1166_s0, 256  ;;  %p832_p10 = scmp.lt.s32.totalorder %s1040_s24, %s1166_s0 }
  0x2b   : > { %p829_p9 = pnand %p828_p7, %p827_p5  ;;  %p833_p2 = scmp.lt.s32.totalorder %s831_s7, %s826_s30 }
  0x2d   : > { %p830_p12 = pneg %p829_p9  ;;  %p834_p13 = por %p833_p2, %p832_p10 }
  0x2f   : > { %p835_p0 = pnand %p834_p13, %p830_p12 }
  0x31   : > { %838 = shalt.err (!%p835_p0)
}
  0x32   : > { %s839_s13 = scalar_lea.vmem %s185_s26, 128  ;;  %s927_s11 = smov [#allocation2]  }
  0x33   : > { %p840_p1 = scmp.ne.s32.totalorder %s185_s26, %s839_s13  ;;  %s844_s14 = sshll.u32 %s927_s11, 4  ;;  %s845_s14 = int_to_ptr.vmem [resolvable:$false] %s844_s14 }
  0x34   : > { %s846_s20 = scalar_lea.vmem %s845_s14, 256  ;;  %p847_p5 = scmp.lt.s32.totalorder %s185_s26, %s845_s14 }
  0x35   : > { %p842_p6 = pnand %p840_p1, %p828_p7  ;;  %p848_p9 = scmp.lt.s32.totalorder %s846_s20, %s839_s13 }
  0x37   : > { %p843_p3 = pneg %p842_p6  ;;  %p849_p4 = por %p848_p9, %p847_p5 }
  0x39   : > { %p850_p8 = pnand %p849_p4, %p843_p3 }
  0x3b   : > { %853 = shalt.err (!%p850_p8)
}
  0x3c   : > { %742 = dma.hbm_to_vmem [thread:$0]  (!%p1042_p11), %s1040_s24, 128, %s185_s26, %s174_s29  }
  0x3d   : > { %p1182_p12 = scmp.ne.s32.totalorder %s1177_s23, 0 }
  0x3e   : > { %s1063_s25 = sand.u32 (!%p1182_p12), 1, %s914_s16   ;;  %p1183_p1 = scmp.ne.s32.totalorder (!%p1182_p12), %s1175_s21, 0 }
  0x3f   : > { %193 = sbr.rel (%p1182_p12) target bundleno = 565 (0x235), region = 36  ;;  %s594_s30 = sshll.u32 (!%p1182_p12), %s1063_s25, 3 }
  0x40   : > { %s196_s5 = scalar_lea.sflag (!%p1182_p12), [#allocation3], %s1063_s25  ;;  %s199_s6 = scalar_lea.vmem (!%p1182_p12), [#allocation2], %s594_s30 }
  0x44   : > { %897 = dma.done.wait (%p1183_p1), %s196_s5, 128  }
  0x45   : > { %899 = vsyncadd (%p1183_p1), %s196_s5, 4294967168  ;;  %p1184_p4 = scmp.eq.s32.totalorder %s977_s19, 0 }
  0x47   : > { %901 = dma.done.wait (%p1184_p4), [#allocation6], 1024   ;;  %p1185_p6 = pmov %p1184_p4 }
  0x48   : > { %v928_v0 = vmov 0.0   ;;  %vm929_vm0 = vmmov 0   ;;  %v788_v1 = vld [vmem:[#allocation5 + $0x38] sm:$0xff]   ;;  %v789_v2 = vld [vmem:[#allocation5 + $0x30] sm:$0xff]   ;;  %v790_v3 = vld [vmem:[#allocation5 + $0x28] sm:$0xff]   ;;  %s608_s28 = sshll.u32 %s977_s19, 7 }
  0x49   : > { %903 = vsyncadd (%p1185_p6), [#allocation6], 4294966272  ;;  %647 = vmatprep.subr.bf16.mxu0 %v928_v0  ;;  %667 = vmatprep.subr.bf16.mxu1 %v928_v0  ;;  %v791_v4 = vld [vmem:[#allocation5 + $0x20] sm:$0xff]   ;;  %v792_v5 = vld [vmem:[#allocation5 + $0x18] sm:$0xff]   ;;  %s227_s29 = scalar_lea.vmem [#allocation7], %s594_s30  ;;  %s505_s13 = scalar_lea.hbm %s1170_s4, %s608_s28 }
  0x4a   : > { %663 = vmatprep.mubr.msk.bf16.mxu0 %vm929_vm0, %v928_v0  ;;  %683 = vmatprep.mubr.msk.bf16.mxu1 %vm929_vm0, %v928_v0  ;;  %v1089_v6 = vld [vmem:[%s199_s6] sm:$0xff]  ;;  %v794_v10 = vld [vmem:[#allocation5 + $0x8] sm:$0xff]   ;;  %v795_v12 = vld [vmem:[#allocation5] sm:$0xff]   ;;  %s507_s7 = sshll.u32 %s227_s29, 4  ;;  %s494_s11 = scalar_lea.sflag [#allocation4], %s1063_s25  ;;  %s508_s7 = int_to_ptr.vmem [resolvable:$true] %s507_s7 }
  0x4b   : > { %648 = vmatpush3.bf16.msra.mxu0 %v788_v1  ;;  %668 = vmatpush3.bf16.msra.mxu1 %v788_v1  ;;  %v246_v7 = vpack.c.bf16 %v1089_v6, %v1089_v6  ;;  %v793_v8 = vld [vmem:[#allocation5 + $0x10] sm:$0xff]   ;;  %s854_s14 = scalar_lea.vmem %s508_s7, 128  ;;  %p1186_p3 = scmp.ne.s32.totalorder %s1180_s10, 0 }
  0x4c   : > { %649 = vmatprep.subr.bf16.mxu0 %v928_v0  ;;  %669 = vmatprep.subr.bf16.mxu1 %v928_v0  ;;  %v605_v47 = vld [vmem:[%s1167_s1] ss:$0 sm:$0xff]  ;;  %p855_p8 = scmp.ne.s32.totalorder %s508_s7, %s854_s14  ;;  %s930_s20 = smov [#allocation7]  }
  0x4d   : > { %v247_v9 = vunpack.c.l.bf16 %v246_v7  ;;  %v606_v49 = vld [vmem:[%s1168_s2] ss:$0 sm:$0xff]  ;;  %s858_s5 = sshll.u32 %s930_s20, 4  ;;  %s859_s5 = int_to_ptr.vmem [resolvable:$false] %s858_s5 }
  0x4e   : > { %p856_p11 = pnand %p855_p8, %p1186_p3  ;;  %s860_s19 = scalar_lea.vmem %s859_s5, 256 }
  0x4f   : > { %650 = vmatpush3.bf16.msra.mxu0 %v789_v2  ;;  %670 = vmatpush3.bf16.msra.mxu1 %v789_v2  ;;  %v248_v11 = vsub.f32 %v1089_v6, %v247_v9  ;;  %p861_p10 = scmp.lt.s32.totalorder %s508_s7, %s859_s5  ;;  %p862_p2 = scmp.lt.s32.totalorder %s860_s19, %s854_s14 }
  0x50   : > { %651 = vmatprep.subr.bf16.mxu0 %v928_v0  ;;  %671 = vmatprep.subr.bf16.mxu1 %v928_v0  ;;  %p857_p7 = pneg %p856_p11 }
  0x51   : > { %v249_v13 = vpack.c.bf16 %v248_v11, %v248_v11  ;;  %p863_p13 = por %p862_p2, %p861_p10 }
  0x53   : > { %652 = vmatpush3.bf16.msra.mxu0 %v790_v3  ;;  %672 = vmatpush3.bf16.msra.mxu1 %v790_v3  ;;  %p864_p0 = pnand %p863_p13, %p857_p7 }
  0x54   : > { %653 = vmatprep.subr.bf16.mxu0 %v928_v0  ;;  %673 = vmatprep.subr.bf16.mxu1 %v928_v0 }
  0x57   : > { %654 = vmatpush3.bf16.msra.mxu0 %v791_v4  ;;  %674 = vmatpush3.bf16.msra.mxu1 %v791_v4 }
  0x58   : > { %655 = vmatprep.subr.bf16.mxu0 %v928_v0  ;;  %675 = vmatprep.subr.bf16.mxu1 %v928_v0 }
  0x5b   : > { %656 = vmatpush3.bf16.msra.mxu0 %v792_v5  ;;  %676 = vmatpush3.bf16.msra.mxu1 %v792_v5 }
  0x5c   : > { %657 = vmatprep.subr.bf16.mxu0 %v928_v0  ;;  %677 = vmatprep.subr.bf16.mxu1 %v928_v0 }
  0x5f   : > { %658 = vmatpush3.bf16.msra.mxu0 %v793_v8  ;;  %678 = vmatpush3.bf16.msra.mxu1 %v793_v8 }
  0x60   : > { %659 = vmatprep.subr.bf16.mxu0 %v928_v0  ;;  %679 = vmatprep.subr.bf16.mxu1 %v928_v0 }
  0x63   : > { %660 = vmatpush3.bf16.msra.mxu0 %v794_v10  ;;  %680 = vmatpush3.bf16.msra.mxu1 %v794_v10 }
  0x64   : > { %661 = vmatprep.subr.bf16.mxu0 %v928_v0  ;;  %681 = vmatprep.subr.bf16.mxu1 %v928_v0 }
  0x67   : > { %662 = vmatpush3.bf16.msra.mxu0 %v795_v12  ;;  %682 = vmatpush3.bf16.msra.mxu1 %v795_v12 }
  0x68   : > { %707 = vmatprep.subr.bf16.mxu1 %v928_v0  ;;  %687 = vmatprep.subr.bf16.mxu0 %v928_v0 }
  0x6a   : > { %664 = vmatmul.mubr.bf16.vlgmr.msra.gmra.mxu0 %v249_v13  ;;  %684 = vmatmul.mubr.bf16.vlgmr.msra.gmra.mxu1 %v246_v7 }
  0x6b   : > { %708 = vmatpush3.bf16.msra.mxu1 %v788_v1  ;;  %688 = vmatpush3.bf16.msra.mxu0 %v788_v1 }
  0x6c   : > { %709 = vmatprep.subr.bf16.mxu1 %v928_v0  ;;  %689 = vmatprep.subr.bf16.mxu0 %v928_v0 }
  0x6d   : > { %723 = vmatprep.mubr.msk.bf16.mxu1 %vm929_vm0, %v928_v0  ;;  %703 = vmatprep.mubr.msk.bf16.mxu0 %vm929_vm0, %v928_v0 }
  0x6f   : > { %710 = vmatpush3.bf16.msra.mxu1 %v789_v2  ;;  %690 = vmatpush3.bf16.msra.mxu0 %v789_v2 }
  0x70   : > { %711 = vmatprep.subr.bf16.mxu1 %v928_v0  ;;  %691 = vmatprep.subr.bf16.mxu0 %v928_v0 }
  0x73   : > { %712 = vmatpush3.bf16.msra.mxu1 %v790_v3  ;;  %692 = vmatpush3.bf16.msra.mxu0 %v790_v3 }
  0x74   : > { %713 = vmatprep.subr.bf16.mxu1 %v928_v0  ;;  %693 = vmatprep.subr.bf16.mxu0 %v928_v0 }
  0x77   : > { %714 = vmatpush3.bf16.msra.mxu1 %v791_v4  ;;  %694 = vmatpush3.bf16.msra.mxu0 %v791_v4 }
  0x78   : > { %715 = vmatprep.subr.bf16.mxu1 %v928_v0  ;;  %695 = vmatprep.subr.bf16.mxu0 %v928_v0 }
  0x7b   : > { %716 = vmatpush3.bf16.msra.mxu1 %v792_v5  ;;  %696 = vmatpush3.bf16.msra.mxu0 %v792_v5 }
  0x7c   : > { %717 = vmatprep.subr.bf16.mxu1 %v928_v0  ;;  %697 = vmatprep.subr.bf16.mxu0 %v928_v0 }
  0x7f   : > { %718 = vmatpush3.bf16.msra.mxu1 %v793_v8  ;;  %698 = vmatpush3.bf16.msra.mxu0 %v793_v8 }
  0x80   : > { %719 = vmatprep.subr.bf16.mxu1 %v928_v0  ;;  %699 = vmatprep.subr.bf16.mxu0 %v928_v0 }
  0x83   : > { %720 = vmatpush3.bf16.msra.mxu1 %v794_v10  ;;  %700 = vmatpush3.bf16.msra.mxu0 %v794_v10 }
  0x84   : > { %721 = vmatprep.subr.bf16.mxu1 %v928_v0  ;;  %701 = vmatprep.subr.bf16.mxu0 %v928_v0 }
  0x87   : > { %722 = vmatpush3.bf16.msra.mxu1 %v795_v12  ;;  %702 = vmatpush3.bf16.msra.mxu0 %v795_v12 }
 0x12a   : > { %v332_v14 = vpop.f32.mrf.mxu0  ;;  %v372_v15 = vpop.f32.mrf.mxu1 }
 0x12b   : > { %v373_v16 = vadd.f32 %v372_v15, %v332_v14 }
 0x12c   : > { %v665_v17 = vpop.f32.mrf.mxu0  ;;  %v685_v18 = vpop.f32.mrf.mxu1 }
 0x12d   : > { %v378_v19 = vmul.f32 0.03125, %v373_v16 }
 0x12e   : > { %v335_v20 = vpop.f32.mrf.mxu0  ;;  %v375_v21 = vpop.f32.mrf.mxu1 }
 0x12f   : > { %v379_v22 = vsub.f32 %v1089_v6, %v378_v19 }
 0x130   : > { %v666_v23 = vpop.f32.mrf.mxu0  ;;  %v686_v24 = vpop.f32.mrf.mxu1 }
 0x131   : > { %v380_v25 = vmul.f32 %v379_v22, %v379_v22 }
 0x133   : > { %v381_v26 = vpack.c.bf16 %v380_v25, %v380_v25 }
 0x135   : > { %v382_v27 = vunpack.c.l.bf16 %v381_v26  ;;  %724 = vmatmul.mubr.bf16.vlgmr.msra.gmra.mxu1 %v381_v26 }
 0x137   : > { %v383_v28 = vsub.f32 %v380_v25, %v382_v27 }
 0x139   : > { %v384_v29 = vpack.c.bf16 %v383_v28, %v383_v28 }
 0x13b   : > { %704 = vmatmul.mubr.bf16.vlgmr.msra.gmra.mxu0 %v384_v29 }
 0x1f5   : > { %v459_v30 = vpop.f32.mrf.mxu1 }
 0x1f7   : > { %v725_v31 = vpop.f32.mrf.mxu1 }
 0x1f9   : > { %v462_v32 = vpop.f32.mrf.mxu1 }
 0x1fb   : > { %v419_v33 = vpop.f32.mrf.mxu0  ;;  %v726_v34 = vpop.f32.mrf.mxu1 }
 0x1fc   : > { %v460_v35 = vadd.f32 %v459_v30, %v419_v33 }
 0x1fd   : > { %v705_v36 = vpop.f32.mrf.mxu0 }
 0x1fe   : > { %v465_v37 = vmul.f32 0.032258064, %v460_v35 }
 0x1ff   : > { %v422_v38 = vpop.f32.mrf.mxu0 }
 0x200   : > { %796 = vrsqrt.f32 %v465_v37  ;;  %vm468_vm1 = vcmp.eq.f32.partialorder %v465_v37, inf  ;;  %v471_v42 = vand.u32 2147483648, %v465_v37  ;;  %vm470_vm2 = vcmp.eq.f32.partialorder %v465_v37, 0.0 }
 0x201   : > { %v706_v39 = vpop.f32.mrf.mxu0 }
 0x20d   : > { %v797_v40 = vpop.eup %796 }
 0x20e   : > { %v467_v41 = vmul.f32 %v797_v40, %v465_v37 }
 0x210   : > { %v469_v43 = vsel %vm468_vm1, %v465_v37, %v467_v41 }
 0x211   : > { %v472_v44 = vsel %vm470_vm2, %v471_v42, %v469_v43 }
 0x212   : > { %v473_v45 = vadd.f32 1e-06, %v472_v44 }
 0x214   : > { %798 = vrcp.f32 %v473_v45 }
 0x221   : > { %v799_v46 = vpop.eup %798 }
 0x222   : > { %v475_v48 = vmul.f32 %v799_v46, %v379_v22 }
 0x224   : > { %v483_v50 = vmul.f32 %v605_v47, %v475_v48 }
 0x226   : > { %v491_v51 = vadd.f32 %v606_v49, %v483_v50 }
 0x228   : > { %492 = vst [vmem:[%s227_s29] sm:$0xff] %v491_v51 }
 0x229   : > { %867 = shalt.err (!%p864_p0)
}
 0x22a   : > { %s868_s30 = scalar_lea.hbm %s505_s13, 128  ;;  %s872_s21 = scalar_lea.hbm %s1170_s4, 256 }
 0x22b   : > { %p869_p5 = scmp.ne.s32.totalorder %s505_s13, %s868_s30  ;;  %p873_p1 = scmp.lt.s32.totalorder %s505_s13, %s1170_s4 }
 0x22c   : > { %p874_p4 = scmp.lt.s32.totalorder %s872_s21, %s868_s30 }
 0x22d   : > { %p870_p9 = pnand %p869_p5, %p1186_p3 }
 0x22e   : > { %p875_p6 = por %p874_p4, %p873_p1 }
 0x22f   : > { %p871_p12 = pneg %p870_p9 }
 0x231   : > { %p876_p8 = pnand %p875_p6, %p871_p12 }
 0x233   : > { %879 = shalt.err (!%p876_p8)
}
 0x234   : > { %733 = dma.vmem_to_hbm [thread:$0]  (%p1186_p3), %s508_s7, 128, %s505_s13, %s494_s11  }
 0x235 PF: > { %s519_s26 = sand.u32 1, %s910_s15   ;;  %p1187_p11 = scmp.ne.s32.totalorder %s1176_s22, 0 }
 0x236   : > { %p1188_p7 = scmp.ge.s32.totalorder %s922_s18, 2  ;;  %s520_s28 = scalar_lea.sflag [#allocation4], %s519_s26 }
 0x238   : > { %p744_p10 = pnand %p1188_p7, %p1187_p11 }
 0x23a   : > { %p745_p2 = pneg %p744_p10 }
 0x23c   : > { %905 = dma.done.wait (%p745_p2), %s520_s28, 128  }
 0x23d   : > { %907 = vsyncadd (%p745_p2), %s520_s28, 4294967168  ;;  %p18_p13 = scmp.ge.s32.totalorder %s1010_s27, 4   ;;  %s1189_s15 = smov %s914_s16 }
 0x23e   : > { %s1190_s16 = smov %s918_s17  ;;  %s1191_s17 = smov %s1027_s9 }
 0x23f   : > { %s1192_s18 = smov %s1010_s27  ;;  %20 = sbr.rel (!%p18_p13) target bundleno = 6 (0x6), region = 85 }
 0x244   :  { %525 = vsyncpa [#allocation3], 1 }
 0x245   :  { %527 = vsyncpa [#allocation3 + $0x1], 1 }
 0x246   :  { %528 = vsyncpa [#allocation6], 1 }
 0x247   :  { %529 = vsyncpa [#allocation4], 1 }
 0x248   :  { %531 = vsyncpa [#allocation4 + $0x1], 1 }

</bundles_post_ra>
